<compile_context>
chip_gen: v7x
topology: tpu7x:2x2x1
jax: 0.10.0
libtpu: 0.0.40
codegen_flags: <defaults>
</compile_context>

<pallas_src>
import functools

import jax
import jax.numpy as jnp
from jax import lax
from jax.experimental import pallas as pl
from jax.experimental.pallas import tpu as pltpu


def _cumsum_kernel(x_ref, tri_ref, o_ref, *, scale, cast_fp32):
    x = x_ref[...]                                   # (TR, Sk)
    if cast_fp32:
        x = x.astype(jnp.float32)
    # tri[k, j] = 1 if k <= j  so  (x @ tri)[r, j] = sum_{k<=j} x[r, k]
    acc = jnp.dot(x, tri_ref[...],
                  preferred_element_type=jnp.float32)  # MXU, f32 accumulate
    o_ref[...] = (acc * scale).astype(o_ref.dtype)


def _pick_block_rows(n_rows, sk, itemsize):
    """~2 MiB lane-dense row blocks, multiple of 8, >= 2 grid steps if possible."""
    if n_rows <= 8:
        return n_rows
    target_bytes = 2 << 20
    br = max(8, min(n_rows, target_bytes // max(1, sk * itemsize)))
    br = (br // 8) * 8
    if br >= n_rows and n_rows >= 16:
        # keep at least 2 grid steps so both v7x TensorCores are used
        br = max(8, ((n_rows // 2) // 8) * 8)
    return br


def cumsum_seq_op(inputs, attention_mask=None, *, seq_op_in_fp32=False):
    """inputs: [..., Sq, Sk] with ndim >= 3 (scale uses shape[2], like PyTorch)."""
    del attention_mask  # the PyTorch module's forward never uses it
    assert inputs.ndim >= 3, "module reads inputs.shape[2]"
    scale = float(inputs.shape[2]) ** -0.5

    orig_shape = inputs.shape
    sk = orig_shape[-1]
    n_rows = 1
    for d in orig_shape[:-1]:
        n_rows *= d
    x2 = inputs.reshape(n_rows, sk)

    # Compute dtype: f32 when requested (or already f32), else input dtype
    # (e.g. bf16 -> bf16 MXU pass with f32 accumulation).
    cast_fp32 = bool(seq_op_in_fp32) and inputs.dtype != jnp.float32
    compute_dtype = jnp.float32 if (seq_op_in_fp32 or inputs.dtype == jnp.float32) \
        else inputs.dtype

    # Upper-triangular ones, built once outside the kernel; constant index_map
    # keeps it resident in VMEM across all grid steps (single DMA).
    rows = lax.broadcasted_iota(jnp.int32, (sk, sk), 0)
    cols = lax.broadcasted_iota(jnp.int32, (sk, sk), 1)
    tri = jnp.where(rows <= cols, 1.0, 0.0).astype(compute_dtype)

    itemsize = jnp.dtype(inputs.dtype).itemsize
    tr = _pick_block_rows(n_rows, sk, itemsize)
    grid = (pl.cdiv(n_rows, tr),)

    blk_bytes = tr * sk * itemsize
    tri_bytes = sk * sk * jnp.dtype(compute_dtype).itemsize
    vmem_limit = int(min(64 << 20,
                         max(16 << 20,
                             4 * blk_bytes          # double-buffered in + out
                             + 2 * tr * sk * 4      # f32 accumulator headroom
                             + 2 * tri_bytes        # resident triangular matrix
                             + (4 << 20))))

    kernel = functools.partial(
        _cumsum_kernel, scale=scale, cast_fp32=cast_fp32)

    out = pl.pallas_call(
        kernel,
        out_shape=jax.ShapeDtypeStruct((n_rows, sk), inputs.dtype),
        grid_spec=pltpu.PrefetchScalarGridSpec(
            num_scalar_prefetch=0,
            grid=grid,
            in_specs=[
                pl.BlockSpec((tr, sk), lambda i: (i, 0)),
                pl.BlockSpec((sk, sk), lambda i: (0, 0)),  # resident, no re-DMA
            ],
            out_specs=pl.BlockSpec((tr, sk), lambda i: (i, 0)),
        ),
        compiler_params=pltpu.CompilerParams(
            dimension_semantics=("parallel",),
            vmem_limit_bytes=vmem_limit),
        cost_estimate=pl.CostEstimate(
            flops=2 * n_rows * sk * sk,
            transcendentals=0,
            bytes_accessed=2 * n_rows * sk * itemsize + tri_bytes),
    )(x2, tri)

    return out.reshape(orig_shape)


def _cumsum_ref(inputs, attention_mask=None, *, seq_op_in_fp32=False):
    """Pure-JAX reference mirroring the PyTorch forward."""
    del attention_mask
    input_dtype = inputs.dtype
    x = inputs.astype(jnp.float32) if seq_op_in_fp32 else inputs
    out = jnp.cumsum(x, axis=-1) * (float(inputs.shape[2]) ** -0.5)
    return out.astype(input_dtype)


if __name__ == "__main__":
    key = jax.random.PRNGKey(0)

    # [B, H, Sq, Sk] attention-score-shaped input, as used in attention.py.
    B, H, S = 2, 4, 16
    x = jax.random.normal(key, (B, H, S, S), dtype=jnp.float32)

    y = jax.block_until_ready(cumsum_seq_op(x, seq_op_in_fp32=False))
    y_ref = _cumsum_ref(x, seq_op_in_fp32=False)
    assert y.shape == x.shape and y.dtype == x.dtype
    assert jnp.allclose(y, y_ref, atol=1e-5, rtol=1e-5), "default-path mismatch"

    y32 = jax.block_until_ready(cumsum_seq_op(x, seq_op_in_fp32=True))
    y32_ref = _cumsum_ref(x, seq_op_in_fp32=True)
    assert jnp.allclose(y32, y32_ref, atol=1e-5, rtol=1e-5), "fp32-path mismatch"

    # bf16 input, fp32 compute path (typical cramming config)
    xb = jax.random.normal(jax.random.PRNGKey(2), (B, H, S, S),
                           dtype=jnp.bfloat16)
    yb = jax.block_until_ready(cumsum_seq_op(xb, seq_op_in_fp32=True))
    yb_ref = _cumsum_ref(xb, seq_op_in_fp32=True)
    assert yb.dtype == jnp.bfloat16
    assert jnp.allclose(yb.astype(jnp.float32), yb_ref.astype(jnp.float32),
                        atol=1e-2, rtol=1e-2), "bf16-path mismatch"

    # non-(8,128)-aligned last dim + (unused) attention_mask argument
    x2 = jax.random.normal(jax.random.PRNGKey(1), (2, 4, 12, 12),
                           dtype=jnp.float32)
    mask = jnp.zeros((1, 1, 12), dtype=bool)
    y2 = jax.block_until_ready(cumsum_seq_op(x2, attention_mask=mask))
    y2_ref = _cumsum_ref(x2)
    assert jnp.allclose(y2, y2_ref, atol=1e-5, rtol=1e-5), "non-aligned mismatch"

    print("KERNEL_OK")
</pallas_src>

<mosaic_0001>
module attributes {stable_mosaic.version = 11 : i64} {
  func.func @_cumsum_kernel(%arg0: i32, %arg1: memref<64x16xf32, #tpu.memory_space<vmem>>, %arg2: memref<16x16xf32, #tpu.memory_space<vmem>>, %arg3: memref<64x16xf32, #tpu.memory_space<vmem>>) attributes {dimension_semantics = [#tpu.dimension_semantics<parallel>], iteration_bounds = array<i64: 2>, scalar_prefetch = 0 : i64, scratch_operands = 0 : i64, tpu.core_type = #tpu.core_type<tc>, window_params = [{transform_indices = @transform_0, window_bounds = array<i64: 64, 16>}, {pipeline_mode = #tpu.pipeline_mode<synchronous>, transform_indices = @transform_1, window_bounds = array<i64: 16, 16>}, {transform_indices = @transform_2, window_bounds = array<i64: 64, 16>}]} {
    %c0 = arith.constant 0 : index
    %c0_0 = arith.constant 0 : index
    %0 = vector.load %arg1[%c0, %c0_0] : memref<64x16xf32, #tpu.memory_space<vmem>>, vector<64x16xf32>
    %c0_1 = arith.constant 0 : index
    %c0_2 = arith.constant 0 : index
    %1 = vector.load %arg2[%c0_1, %c0_2] : memref<16x16xf32, #tpu.memory_space<vmem>>, vector<16x16xf32>
    %cst = arith.constant dense<0.000000e+00> : vector<64x16xf32>
    %2 = tpu.matmul %0, %1, %cst {dimension_numbers = #tpu.dot_dimension_numbers<[1], [0], [0], [1], [0, 0, 1, 1], [], []>} : vector<64x16xf32>, vector<16x16xf32>, vector<64x16xf32> -> vector<64x16xf32>
    %cst_3 = arith.constant 2.500000e-01 : f32
    %3 = vector.broadcast %cst_3 : f32 to vector<64x16xf32>
    %4 = arith.mulf %2, %3 : vector<64x16xf32>
    %c0_4 = arith.constant 0 : index
    %c0_5 = arith.constant 0 : index
    %5 = vector.load %arg3[%c0_4, %c0_5] : memref<64x16xf32, #tpu.memory_space<vmem>>, vector<64x16xf32>
    tpu.vector_store %arg3[%c0_4, %c0_5], %4 {strides = array<i32>} : memref<64x16xf32, #tpu.memory_space<vmem>>, vector<64x16xf32>,
    return
  }
  func.func @transform_0(%arg0: i32) -> (i32, i32) {
    %c0_i32 = arith.constant 0 : i32
    %c0_i32_0 = arith.constant 0 : i32
    return %arg0, %c0_i32 : i32, i32
  }
  func.func @transform_1(%arg0: i32) -> (i32, i32) {
    %c0_i32 = arith.constant 0 : i32
    %c0_i32_0 = arith.constant 0 : i32
    %c0_i32_1 = arith.constant 0 : i32
    return %c0_i32, %c0_i32_0 : i32, i32
  }
  func.func @transform_2(%arg0: i32) -> (i32, i32) {
    %c0_i32 = arith.constant 0 : i32
    %c0_i32_0 = arith.constant 0 : i32
    return %arg0, %c0_i32 : i32, i32
  }
}

</mosaic_0001>

<bundles_post_ra>
// kernel: tpu_custom_call.1
= control target key start
LH: loop header
LB: loop body
LE: loop exit
PB: predicated region body
PF: predicated region fallthrough
CT: control target
= control target key end

     0   :  { %s441_s9 = smov 0   ;;  %s480_s0 = inlined_call_operand.vmem [shape: f32[128,16], index: 0, kind: input, shape index: {}]   ;;  %s481_s1 = inlined_call_operand.vmem [shape: f32[16,16], index: 1, kind: input, shape index: {}]   ;;  %s482_s2 = inlined_call_operand.vmem [shape: f32[128,16], index: 2, kind: output, shape index: {}]  }
   0x1 LB: > { %s359_s10 = sadd.s32 4294967295, %s424_s9   ;;  %p363_p0 = scmp.ge.s32.totalorder %s424_s9, 1  ;;  %s424_s9 = sphi %s441_s9, %s12_s9  }
   0x2   : > { %p113_p1 = scmp.lt.s32.totalorder %s424_s9, 3 }
   0x4   : > { %p114_p2 = pnand %p363_p0, %p113_p1 }
   0x5   : > { %v155_v0 = vld [vmem:[%s481_s1] sm:$0xff] (!%p114_p2)  ;;  %v156_v1 = vld [vmem:[%s481_s1 + $0x8] sm:$0xff] (!%p114_p2)  ;;  %s364_s15 = sshll.u32 (!%p114_p2), %s359_s10, 3  ;;  %vm157_vm0 = vcmask (!%p114_p2), 130048  }
   0x6   : > { %117 = sbr.rel (%p114_p2) target bundleno = 239 (0xef), region = 28  ;;  %v404_v2 = vpack.c.bf16 (!%p114_p2), %v156_v1, %v155_v0  ;;  %p136_p3 = scmp.lt.s32.totalorder (!%p114_p2), %s364_s15, 15 }
   0x8   : > { %405 = vmatprep.subr.bf16.mxu0 (!%p114_p2), %v404_v2  ;;  %408 = vmatprep.subr.bf16.mxu1 (!%p114_p2), %v404_v2 }
   0x9   : > { %407 = vmatpush3.bf16.msra.mxu0 (!%p114_p2), %v404_v2  ;;  %409 = vmatpush3.bf16.msra.mxu1 (!%p114_p2), %v404_v2 }
   0xd   : > { %s484_s15 = smov (!%p136_p3, %s364_s15), 15 }
   0xe   : > { %s365_s16 = sshll.u32 %s484_s15, 3 }
   0xf   : > { %s139_s19 = scalar_lea.vmem %s480_s0, %s365_s16  ;;  %s145_s22 = scalar_lea.vmem %s482_s2, %s365_s16 }
  0x10   : > { %v147_v3 = vld [vmem:[%s139_s19] sm:$0xff]  ;;  %v148_v5 = vld [vmem:[%s139_s19 + $0x8] sm:$0xff]  ;;  %v149_v7 = vld [vmem:[%s139_s19 + $0x10] sm:$0xff] }
  0x11   : > { %v151_v4 = vld [vmem:[%s139_s19 + $0x20] sm:$0xff]  ;;  %392 = vmatprep.mubr.msk.f32.mxu0 %vm157_vm0, %v147_v3  ;;  %v152_v6 = vld [vmem:[%s139_s19 + $0x28] sm:$0xff]  ;;  %v153_v8 = vld [vmem:[%s139_s19 + $0x30] sm:$0xff] }
  0x12   : > { %398 = vmatprep.mubr.msk.f32.mxu1 %vm157_vm0, %v151_v4  ;;  %393 = vmatmul.mubr.msk.f32.vlgmr.msra.gmra.mrb[0].mxu0 %vm157_vm0, %v148_v5  ;;  %v150_v9 = vld [vmem:[%s139_s19 + $0x18] sm:$0xff] }
  0x13   : > { %399 = vmatmul.mubr.msk.f32.vlgmr.msra.gmra.mrb[0].mxu1 %vm157_vm0, %v152_v6  ;;  %395 = vmatprep.mubr.msk.f32.mxu0 %vm157_vm0, %v149_v7  ;;  %v154_v10 = vld [vmem:[%s139_s19 + $0x38] sm:$0xff] }
  0x14   : > { %401 = vmatprep.mubr.msk.f32.mxu1 %vm157_vm0, %v153_v8 }
  0x16   : > { %396 = vmatmul.mubr.msk.f32.gmra.mrb[2].mxu0 %vm157_vm0, %v150_v9 }
  0x17   : > { %402 = vmatmul.mubr.msk.f32.gmra.mrb[2].mxu1 %vm157_vm0, %v154_v10 }
  0xe5   : > { %v394_v11 = vpop.f32.mrb[0].mxu0 }
  0xe6   : > { %v400_v12 = vpop.f32.mrb[0].mxu1  ;;  %v288_v13 = vmul.f32 0.25, %v394_v11  ;;  %v248_v15 = vpop.f32.mrb[1].mxu0 }
  0xe7   : > { %v292_v14 = vmul.f32 0.25, %v400_v12  ;;  %v268_v16 = vpop.f32.mrb[1].mxu1  ;;  %v287_v17 = vmul.f32 0.25, %v248_v15 }
  0xe8   : > { %v291_v18 = vmul.f32 0.25, %v268_v16  ;;  %296 = vst.msk [vmem:[%s145_s22 + $0x8] sm:$0xff] %vm157_vm0, %v288_v13 }
  0xe9   : > { %300 = vst.msk [vmem:[%s145_s22 + $0x28] sm:$0xff] %vm157_vm0, %v292_v14  ;;  %295 = vst.msk [vmem:[%s145_s22] sm:$0xff] %vm157_vm0, %v287_v17  ;;  %v397_v19 = vpop.f32.mrb[2].mxu0 }
  0xea   : > { %299 = vst.msk [vmem:[%s145_s22 + $0x20] sm:$0xff] %vm157_vm0, %v291_v18  ;;  %v403_v20 = vpop.f32.mrb[2].mxu1  ;;  %v290_v21 = vmul.f32 0.25, %v397_v19  ;;  %v258_v23 = vpop.f32.mrb[3].mxu0 }
  0xeb   : > { %v294_v22 = vmul.f32 0.25, %v403_v20  ;;  %v278_v24 = vpop.f32.mrb[3].mxu1  ;;  %v289_v25 = vmul.f32 0.25, %v258_v23 }
  0xec   : > { %v293_v26 = vmul.f32 0.25, %v278_v24  ;;  %298 = vst.msk [vmem:[%s145_s22 + $0x18] sm:$0xff] %vm157_vm0, %v290_v21 }
  0xed   : > { %302 = vst.msk [vmem:[%s145_s22 + $0x38] sm:$0xff] %vm157_vm0, %v294_v22  ;;  %297 = vst.msk [vmem:[%s145_s22 + $0x10] sm:$0xff] %vm157_vm0, %v289_v25 }
  0xee   : > { %301 = vst.msk [vmem:[%s145_s22 + $0x30] sm:$0xff] %vm157_vm0, %v293_v26 }
  0xef PF: > { %s12_s9 = sadd.s32 1, %s424_s9  }
  0xf0   : > { %p9_p4 = scmp.ge.s32.totalorder %s12_s9, 4  }
  0xf2   :  { %11 = sbr.rel (!%p9_p4) target bundleno = 1 (0x1), region = 58 }

</bundles_post_ra>
